<compile_context>
chip_gen: v7x
topology: tpu7x:2x2x1
jax: 0.10.0
libtpu: 0.0.40
codegen_flags: <defaults>
</compile_context>

<pallas_src>
import math

import jax
import jax.numpy as jnp
from jax.experimental import pallas as pl
from jax.experimental.pallas import tpu as pltpu


# ----------------------------------------------------------------------------
# Kernel
# ----------------------------------------------------------------------------
def _pe_add_kernel(x_ref, pe_ref, o_ref):
    # x_ref : (TS, BD) tile of rows (batch*d_model flattened into the lane dim)
    # pe_ref: (1, BD)  constant block, VMEM-resident across the whole grid
    # o_ref : (TS, BD)
    o_ref[...] = x_ref[...] + pe_ref[...]   # implicit (1,BD)->(TS,BD) broadcast


# ----------------------------------------------------------------------------
# PE table construction (parameter glue, plain JAX)
# ----------------------------------------------------------------------------
def make_positional_encoding(d_model: int, max_len: int = 200,
                             dtype=jnp.float32) -> jnp.ndarray:
    position = jnp.arange(max_len, dtype=jnp.float32)[:, None]            # (L, 1)
    div_term = jnp.exp(jnp.arange(0, d_model, 2, dtype=jnp.float32)
                       * (-math.log(10000.0) / d_model))                  # (D/2,)
    pe = jnp.zeros((max_len, d_model), jnp.float32)
    pe = pe.at[:, 0::2].set(jnp.sin(position * div_term))
    pe = pe.at[:, 1::2].set(jnp.cos(position * div_term))
    return pe.astype(dtype)                                               # (L, D)


# ----------------------------------------------------------------------------
# Generation / tiling helpers (all trace-time Python ints)
# ----------------------------------------------------------------------------
def _cdiv(a: int, b: int) -> int:
    return -(-a // b)


def _tpu_kind() -> str:
    try:
        return jax.devices()[0].device_kind.lower()
    except Exception:
        return ""


def _is_dual_tensorcore(kind: str) -> bool:
    # v7x exposes 2 TensorCores per chip; v5e/v6e are single-TC.
    return ("v7" in kind) or ("7x" in kind) or ("tpu7" in kind)


def _small_shape_threshold_bytes(kind: str) -> int:
    # Scale the "skip the kernel" cutoff with HBM bandwidth: the fixed
    # pallas_call launch cost covers more bytes on faster HBM.
    if _is_dual_tensorcore(kind):
        return 1 << 20            # ~1 MiB on v7x (3.2 TB/s)
    if "v6" in kind:
        return 512 << 10          # v6e (~1.4 TB/s)
    return 256 << 10              # v5e and default


def _sublane_multiple(dtype) -> int:
    # Sub-32-bit dtypes pack along sublanes: (8,128) f32, (16,128) bf16, (32,128) int8.
    itemsize = jnp.dtype(dtype).itemsize
    return max(8, 32 // max(itemsize, 1))


def _choose_tile_rows(num_rows: int, row_bytes: int, sub: int, *,
                      target_tile_bytes: int, max_tile_bytes: int,
                      min_steps: int, prefer_even: bool) -> int:
    """Rows per grid step.

    ~target_tile_bytes per tile, capped by the VMEM buffer budget, aligned to
    the dtype's packed sublane tile, with (on dual-TC chips) >= min_steps grid
    steps and an even step count when the data is large enough.
    """
    ts = max(1, target_tile_bytes // max(row_bytes, 1))
    if min_steps > 1:
        ts = min(ts, _cdiv(num_rows, min_steps))
    ts = min(ts, max(1, max_tile_bytes // max(row_bytes, 1)))
    ts = max(sub, (ts // sub) * sub)          # sublane-aligned
    ts = min(ts, num_rows)                    # full extent is always legal

    if prefer_even and ts < num_rows:
        steps = _cdiv(num_rows, ts)
        if steps > 1 and steps % 2 == 1:
            # Shrink tiles slightly so both TensorCores get an equal share.
            ts2 = _cdiv(num_rows, steps + 1)
            ts2 = max(sub, _cdiv(ts2, sub) * sub)     # round UP to sublane tile
            if ts2 < num_rows and _cdiv(num_rows, ts2) % 2 == 0:
                ts = ts2
    return ts


# ----------------------------------------------------------------------------
# Forward wrapper
# ----------------------------------------------------------------------------
def positional_encoding_forward(x: jnp.ndarray, pe: jnp.ndarray,
                                *, use_pallas=None) -> jnp.ndarray:
    """x: [seq_len, batch, d_model]; pe: [max_len, d_model] (max_len >= batch)."""
    S, B, D = x.shape
    assert B <= pe.shape[0], (
        f"batch ({B}) exceeds positional-encoding max_len ({pe.shape[0]})")
    pe_b = pe[:B].astype(x.dtype)     # module uses pe[:x.size(1)] (batch index!)

    BD = B * D
    itemsize = jnp.dtype(x.dtype).itemsize
    kind = _tpu_kind()

    # Dispatch: KB-scale tensors (launch cost dominates) and non-lane-dense
    # flattenings (masked partial stores, no win over XLA) use the fused XLA add.
    if use_pallas is None:
        big_enough = x.size * itemsize >= _small_shape_threshold_bytes(kind)
        lane_dense = (BD % 128 == 0)
        use_pallas = big_enough and lane_dense
    if not use_pallas or S == 0:
        return x + pe_b[None, :, :]

    # Lane-dense 2-D layout: rows = sequence positions, lanes = flattened (B, D).
    x2 = x.reshape(S, BD)
    pe2 = pe_b.reshape(1, BD)

    dual_tc = _is_dual_tensorcore(kind)
    row_bytes = BD * itemsize
    sub = _sublane_multiple(x.dtype)
    ts = _choose_tile_rows(
        S, row_bytes, sub,
        target_tile_bytes=4 << 20,          # ~4 MiB tiles (>=85% of HBM roofline)
        max_tile_bytes=6 << 20,             # keeps 2 in + 2 out bufs under budget
        min_steps=4 if dual_tc else 1,      # >=2 pipelined steps per TC on v7x
        prefer_even=dual_tc,                # balanced split across both TCs
    )
    grid = (_cdiv(S, ts),)

    # VMEM budget derived from actual usage: 2 in + 2 out double-buffers of the
    # row tile, plus the (double-buffered) PE block, plus slack.
    tile_bytes = ts * BD * itemsize
    pe_bytes = BD * itemsize
    vmem_limit = 4 * tile_bytes + 2 * pe_bytes + (2 << 20)
    vmem_limit = int(min(48 << 20, max(24 << 20, vmem_limit)))

    out2 = pl.pallas_call(
        _pe_add_kernel,
        out_shape=jax.ShapeDtypeStruct((S, BD), x.dtype),
        grid=grid,
        in_specs=[
            pl.BlockSpec((ts, BD), lambda s: (s, 0)),
            pl.BlockSpec((1, BD), lambda s: (0, 0)),   # constant -> DMA'd once
        ],
        out_specs=pl.BlockSpec((ts, BD), lambda s: (s, 0)),
        compiler_params=pltpu.CompilerParams(
            dimension_semantics=("parallel",),          # shards steps across TCs (v7x)
            vmem_limit_bytes=vmem_limit,
        ),
    )(x2, pe2)

    return out2.reshape(S, B, D)


# ----------------------------------------------------------------------------
# Self-test
# ----------------------------------------------------------------------------
if __name__ == "__main__":
    d_model, max_len = 32, 200
    pe = make_positional_encoding(d_model, max_len=max_len)

    key = jax.random.PRNGKey(0)
    k1, k2 = jax.random.split(key)

    # 1) Module-consistent small shape, forced through the Pallas kernel.
    S1, B1 = 8, 4
    x1 = jax.random.normal(k1, (S1, B1, d_model), dtype=jnp.float32)
    out1 = jax.block_until_ready(
        positional_encoding_forward(x1, pe, use_pallas=True))
    ref1 = x1 + pe[:B1][None, :, :]     # PyTorch forward with eval-mode dropout
    assert out1.shape == (S1, B1, d_model)
    assert jnp.allclose(out1, ref1, atol=1e-6, rtol=1e-6)

    # 2) Longer sequence: exercises the coarsened multi-step (even) grid.
    S2, B2 = 1024, 4
    x2 = jax.random.normal(k2, (S2, B2, d_model), dtype=jnp.float32)
    out2 = jax.block_until_ready(
        positional_encoding_forward(x2, pe, use_pallas=True))
    ref2 = x2 + pe[:B2][None, :, :]
    assert out2.shape == (S2, B2, d_model)
    assert jnp.allclose(out2, ref2, atol=1e-6, rtol=1e-6)

    # 3) Tiny-shape auto dispatch (plain-JAX fast path).
    out3 = jax.block_until_ready(positional_encoding_forward(x1, pe))
    assert jnp.allclose(out3, ref1, atol=1e-6, rtol=1e-6)

    print("KERNEL_OK")
</pallas_src>

<mosaic_0001>
module attributes {stable_mosaic.version = 11 : i64} {
  func.func @_pe_add_kernel(%arg0: i32, %arg1: memref<8x128xf32, #tpu.memory_space<vmem>>, %arg2: memref<1x128xf32, #tpu.memory_space<vmem>>, %arg3: memref<8x128xf32, #tpu.memory_space<vmem>>) attributes {dimension_semantics = [#tpu.dimension_semantics<parallel>], iteration_bounds = array<i64: 1>, scalar_prefetch = 0 : i64, scratch_operands = 0 : i64, tpu.core_type = #tpu.core_type<tc>, window_params = [{transform_indices = @transform_0, window_bounds = array<i64: 8, 128>}, {pipeline_mode = #tpu.pipeline_mode<synchronous>, transform_indices = @transform_1, window_bounds = array<i64: 1, 128>}, {transform_indices = @transform_2, window_bounds = array<i64: 8, 128>}]} {
    %c0 = arith.constant 0 : index
    %c0_0 = arith.constant 0 : index
    %0 = vector.load %arg1[%c0, %c0_0] : memref<8x128xf32, #tpu.memory_space<vmem>>, vector<8x128xf32>
    %c0_1 = arith.constant 0 : index
    %c0_2 = arith.constant 0 : index
    %1 = vector.load %arg2[%c0_1, %c0_2] : memref<1x128xf32, #tpu.memory_space<vmem>>, vector<1x128xf32>
    %2 = vector.broadcast %1 : vector<1x128xf32> to vector<8x128xf32>
    %3 = arith.addf %0, %2 : vector<8x128xf32>
    %c0_3 = arith.constant 0 : index
    %c0_4 = arith.constant 0 : index
    %4 = vector.load %arg3[%c0_3, %c0_4] : memref<8x128xf32, #tpu.memory_space<vmem>>, vector<8x128xf32>
    tpu.vector_store %arg3[%c0_3, %c0_4], %3 {strides = array<i32>} : memref<8x128xf32, #tpu.memory_space<vmem>>, vector<8x128xf32>,
    return
  }
  func.func @transform_0(%arg0: i32) -> (i32, i32) {
    %c0_i32 = arith.constant 0 : i32
    %c0_i32_0 = arith.constant 0 : i32
    return %arg0, %c0_i32 : i32, i32
  }
  func.func @transform_1(%arg0: i32) -> (i32, i32) {
    %c0_i32 = arith.constant 0 : i32
    %c0_i32_0 = arith.constant 0 : i32
    %c0_i32_1 = arith.constant 0 : i32
    return %c0_i32, %c0_i32_0 : i32, i32
  }
  func.func @transform_2(%arg0: i32) -> (i32, i32) {
    %c0_i32 = arith.constant 0 : i32
    %c0_i32_0 = arith.constant 0 : i32
    return %arg0, %c0_i32 : i32, i32
  }
}

</mosaic_0001>

<bundles_post_ra>
// kernel: tpu_custom_call.1
= control target key start
LH: loop header
LB: loop body
LE: loop exit
PB: predicated region body
PF: predicated region fallthrough
CT: control target
= control target key end

     0   :  { %7 = vsyncpa [#allocation3], 0  ;;  %s144_s0 = inlined_call_operand.hbm [shape: f32[8,128], index: 0, kind: input, shape index: {}]   ;;  %s145_s1 = inlined_call_operand.vmem [shape: f32[1,128], index: 1, kind: input, shape index: {}]   ;;  %s146_s2 = inlined_call_operand.hbm [shape: f32[8,128], index: 2, kind: output, shape index: {}]  }
   0x1   :  { %8 = vsyncpa [#allocation4], 0  ;;  %s100_s9 = smov [#allocation2]   ;;  %s52_s13 = scalar_lea.hbm %s144_s0, 128 }
   0x2   :  { %s15_s10 = sshll.u32 %s100_s9, 4  ;;  %p53_p0 = scmp.ne.s32.totalorder %s144_s0, %s52_s13  ;;  %s16_s10 = int_to_ptr.vmem [resolvable:$true] %s15_s10 }
   0x3   :  { %p56_p1 = scmp.lt.u32.totalorder %s52_s13, %s144_s0 }
   0x5   :  { %p58_p2 = pnand %p56_p1, %p53_p0 }
   0x7   :  { %61 = shalt.err (!%p58_p2)
}
   0x8   :  { %s62_s18 = scalar_lea.vmem %s16_s10, 128  ;;  %p67_p4 = scmp.lt.s32.totalorder %s16_s10, %s16_s10 }
   0x9   :  { %p63_p3 = scmp.ne.s32.totalorder %s16_s10, %s62_s18  ;;  %p68_p5 = scmp.lt.s32.totalorder %s62_s18, %s62_s18 }
   0xb   :  { %p69_p6 = por %p68_p5, %p67_p4 }
   0xd   :  { %p70_p7 = pnand %p69_p6, %p63_p3 }
   0xf   :  { %73 = shalt.err (!%p70_p7)
}
  0x10   :  { %18 = dma.hbm_to_vmem [thread:$0]  %s144_s0, 128, %s16_s10, [#allocation3]  }
  0x11   :  { %96 = dma.done.wait [#allocation3], 128  }
  0x12   :  { %97 = vsyncadd [#allocation3], 4294967168  ;;  %s101_s21 = smov [#allocation5]   ;;  %v24_v0 = vld [vmem:[#allocation2] sm:$0xff] }
  0x13   :  { %s40_s22 = sshll.u32 %s101_s21, 4  ;;  %v49_v1 = vld [vmem:[%s145_s1] ss:$0 sm:$0xff]  ;;  %s41_s22 = int_to_ptr.vmem [resolvable:$true] %s40_s22 }
  0x14   :  { %v32_v2 = vadd.f32 %v49_v1, %v24_v0  ;;  %s74_s25 = scalar_lea.vmem %s41_s22, 128  ;;  %p79_p9 = scmp.lt.s32.totalorder %s41_s22, %s41_s22 }
  0x15   :  { %p75_p8 = scmp.ne.s32.totalorder %s41_s22, %s74_s25  ;;  %p80_p10 = scmp.lt.s32.totalorder %s74_s25, %s74_s25 }
  0x16   :  { %33 = vst [vmem:[#allocation5] sm:$0xff] %v32_v2 }
  0x17   :  { %p81_p11 = por %p80_p10, %p79_p9 }
  0x19   :  { %p82_p12 = pnand %p81_p11, %p75_p8 }
  0x1b   :  { %85 = shalt.err (!%p82_p12)
}
  0x1c   :  { %s86_s27 = scalar_lea.hbm %s146_s2, 128 }
  0x1d   :  { %p87_p13 = scmp.ne.s32.totalorder %s146_s2, %s86_s27  ;;  %p90_p0 = scmp.lt.u32.totalorder %s86_s27, %s146_s2 }
  0x1f   :  { %p92_p1 = pnand %p90_p0, %p87_p13 }
  0x21   :  { %95 = shalt.err (!%p92_p1)
}
  0x22   :  { %43 = dma.vmem_to_hbm [thread:$0]  %s41_s22, 128, %s146_s2, [#allocation4]  }
  0x23   :  { %98 = dma.done.wait [#allocation4], 128  }
  0x24   :  { %99 = vsyncadd [#allocation4], 4294967168 }
  0x25   :  { %47 = vsyncpa [#allocation3], 1 }
  0x26   :  { %48 = vsyncpa [#allocation4], 1 }

</bundles_post_ra>
